<compile_context>
chip_gen: v5e
topology: v5e:2x2
jax: 0.10.0
libtpu: 0.0.40
codegen_flags: <defaults>
</compile_context>

<pallas_src>
import functools

import jax
import jax.numpy as jnp
from jax import lax
from jax.experimental import pallas as pl
from jax.experimental.pallas import tpu as pltpu


def _round_up(x: int, m: int) -> int:
    return ((x + m - 1) // m) * m


def _gaussian_smearing_kernel(dist_ref, out_ref, *, coeff, start, step, g):
    # dist_ref: (tile_n, 1) f32        out_ref: (tile_n, g) f32
    d = dist_ref[...]                                                # (tile_n, 1)
    g_idx = lax.broadcasted_iota(jnp.int32, (1, g), 1).astype(jnp.float32)
    offset = start + g_idx * step                                    # (1, g)
    x = d - offset                                                   # (tile_n, g)
    out_ref[...] = jnp.exp(coeff * (x * x))


def gaussian_smearing(dist, *, start=0.0, stop=5.0, num_gaussians=50,
                      tile_n=8192):
    """dist: any-shape float array (flattened) -> (N, num_gaussians) float32."""
    if num_gaussians < 2:
        raise ValueError("num_gaussians must be >= 2 (step would divide by 0)")

    dist = jnp.asarray(dist, jnp.float32).reshape(-1)
    n = dist.shape[0]
    if n == 0:
        return jnp.zeros((0, num_gaussians), jnp.float32)

    step = (stop - start) / (num_gaussians - 1)
    coeff = -0.5 / step ** 2

    # N-tiling: multiple of 8 sublanes, up to tile_n rows per step, clamped to
    # the (8-rounded) problem size so tiny inputs don't allocate huge buffers.
    # VMEM per step (both the (tile,1) input and (tile,G) output pad to 128
    # lanes inside VMEM): 2 in + 2 out buffers = tile * 2048 B
    #   -> 16 MiB at tile=8192, within the 32 MiB scoped limit set below.
    tile = min(int(tile_n), _round_up(n, 8))
    tile = max(8, (tile // 8) * 8)

    kernel = functools.partial(
        _gaussian_smearing_kernel, coeff=coeff, start=start, step=step,
        g=num_gaussians)

    out = pl.pallas_call(
        kernel,
        out_shape=jax.ShapeDtypeStruct((n, num_gaussians), jnp.float32),
        grid=(pl.cdiv(n, tile),),
        in_specs=[pl.BlockSpec((tile, 1), lambda i: (i, 0))],
        # Last dim == full array dim -> allowed by the (8,128) rule; the
        # kernel writes (n, num_gaussians) directly, no post-call slice.
        out_specs=pl.BlockSpec((tile, num_gaussians), lambda i: (i, 0)),
        compiler_params=pltpu.CompilerParams(
            dimension_semantics=("parallel",),
            vmem_limit_bytes=32 * 1024 * 1024),
    )(dist.reshape(n, 1))

    return out


def _reference(dist, start=0.0, stop=5.0, num_gaussians=50):
    dist = jnp.asarray(dist, jnp.float32).reshape(-1, 1)
    offset = jnp.linspace(start, stop, num_gaussians, dtype=jnp.float32)
    coeff = -0.5 / ((stop - start) / (num_gaussians - 1)) ** 2
    d = dist - offset.reshape(1, -1)
    return jnp.exp(coeff * d * d)


if __name__ == "__main__":
    key = jax.random.PRNGKey(0)

    # Small deterministic example: N = 64 pairwise distances in [0, 5).
    n = 64
    dist = jax.random.uniform(key, (n,), dtype=jnp.float32,
                              minval=0.0, maxval=5.0)
    out = jax.block_until_ready(gaussian_smearing(dist))
    ref = _reference(dist)
    assert out.shape == (n, 50), out.shape
    assert jnp.allclose(out, ref, atol=1e-5, rtol=1e-5), float(
        jnp.max(jnp.abs(out - ref)))

    # Second check: multi-step grid with a ragged edge block (300 % 128 != 0).
    n2 = 300
    dist2 = jax.random.uniform(jax.random.PRNGKey(1), (n2,), dtype=jnp.float32,
                               minval=0.0, maxval=5.0)
    out2 = jax.block_until_ready(gaussian_smearing(dist2, tile_n=128))
    ref2 = _reference(dist2)
    assert out2.shape == (n2, 50), out2.shape
    assert jnp.allclose(out2, ref2, atol=1e-5, rtol=1e-5), float(
        jnp.max(jnp.abs(out2 - ref2)))

    print("KERNEL_OK")
</pallas_src>

<mosaic_0001>
module attributes {stable_mosaic.version = 11 : i64} {
  func.func @_gaussian_smearing_kernel(%arg0: i32, %arg1: memref<64x1xf32, #tpu.memory_space<vmem>>, %arg2: memref<64x50xf32, #tpu.memory_space<vmem>>) attributes {dimension_semantics = [#tpu.dimension_semantics<parallel>], iteration_bounds = array<i64: 1>, scalar_prefetch = 0 : i64, scratch_operands = 0 : i64, tpu.core_type = #tpu.core_type<tc>, window_params = [{transform_indices = @transform_0, window_bounds = array<i64: 64, 1>}, {transform_indices = @transform_1, window_bounds = array<i64: 64, 50>}]} {
    %c0 = arith.constant 0 : index
    %c0_0 = arith.constant 0 : index
    %0 = vector.load %arg1[%c0, %c0_0] : memref<64x1xf32, #tpu.memory_space<vmem>>, vector<64x1xf32>
    %1 = tpu.iota {dimensions = array<i32: 1>} : vector<1x50xi32>
    %2 = arith.sitofp %1 : vector<1x50xi32> to vector<1x50xf32>
    %cst = arith.constant 0.10204082 : f32
    %3 = vector.broadcast %cst : f32 to vector<1x50xf32>
    %4 = arith.mulf %2, %3 : vector<1x50xf32>
    %cst_1 = arith.constant 0.000000e+00 : f32
    %5 = vector.broadcast %cst_1 : f32 to vector<1x50xf32>
    %6 = arith.addf %5, %4 : vector<1x50xf32>
    %7 = vector.broadcast %0 : vector<64x1xf32> to vector<64x50xf32>
    %8 = vector.broadcast %6 : vector<1x50xf32> to vector<64x50xf32>
    %9 = arith.subf %7, %8 : vector<64x50xf32>
    %10 = arith.mulf %9, %9 : vector<64x50xf32>
    %cst_2 = arith.constant -4.802000e+01 : f32
    %11 = vector.broadcast %cst_2 : f32 to vector<64x50xf32>
    %12 = arith.mulf %11, %10 : vector<64x50xf32>
    %13 = math.exp %12 : vector<64x50xf32>
    %c0_3 = arith.constant 0 : index
    %c0_4 = arith.constant 0 : index
    %14 = vector.load %arg2[%c0_3, %c0_4] : memref<64x50xf32, #tpu.memory_space<vmem>>, vector<64x50xf32>
    tpu.vector_store %arg2[%c0_3, %c0_4], %13 {strides = array<i32>} : memref<64x50xf32, #tpu.memory_space<vmem>>, vector<64x50xf32>,
    return
  }
  func.func @transform_0(%arg0: i32) -> (i32, i32) {
    %c0_i32 = arith.constant 0 : i32
    %c0_i32_0 = arith.constant 0 : i32
    return %arg0, %c0_i32 : i32, i32
  }
  func.func @transform_1(%arg0: i32) -> (i32, i32) {
    %c0_i32 = arith.constant 0 : i32
    %c0_i32_0 = arith.constant 0 : i32
    return %arg0, %c0_i32 : i32, i32
  }
}

</mosaic_0001>

<bundles_post_ra>
// kernel: tpu_custom_call.1
= control target key start
LH: loop header
LB: loop body
LE: loop exit
PB: predicated region body
PF: predicated region fallthrough
CT: control target
= control target key end

     0   :  { %v134_v0 = vmov 0   ;;  %v16_v9 = vlaneseq  ;;  %vm101_vm0 = vcmask 408576   ;;  %s201_s0 = inlined_call_operand.vmem [shape: f32[64,1], index: 0, kind: input, shape index: {}]   ;;  %s202_s1 = inlined_call_operand.vmem [shape: f32[64,50], index: 1, kind: output, shape index: {}]  }
   0x1   :  { %116 = vset.pattern.permute.xlu1 %v134_v0  ;;  %115 = vset.pattern.permute.xlu0 %v134_v0  ;;  %v10_v1 = vld [vmem:[%s201_s0 + $0x10] sm:$0xff]  ;;  %v8_v2 = vld [vmem:[%s201_s0] sm:$0xff]  ;;  %v11_v4 = vld [vmem:[%s201_s0 + $0x18] sm:$0xff] }
   0x2   :  { %33 = vperm.xlu1 %116, %v10_v1   ;;  %23 = vperm.xlu0 %115, %v8_v2   ;;  %v12_v3 = vld [vmem:[%s201_s0 + $0x20] sm:$0xff]  ;;  %v9_v5 = vld [vmem:[%s201_s0 + $0x8] sm:$0xff]  ;;  %v15_v7 = vld [vmem:[%s201_s0 + $0x38] sm:$0xff]  ;;  %v17_v10 = vand.u32 127, %v16_v9 }
   0x3   :  { %117 = vset.pattern.permute.xlu2 %v134_v0  ;;  %v13_v6 = vld [vmem:[%s201_s0 + $0x28] sm:$0xff]  ;;  %v14_v8 = vld [vmem:[%s201_s0 + $0x30] sm:$0xff] }
   0x4   :  { %43 = vperm.xlu2 %117, %v12_v3   ;;  %v18_v11 = vcvt.s32.f32 %v17_v10 }
   0x6   :  { %v19_v12 = vmul.f32 0.10204082, %v18_v11 }
   0xa   :  { %38 = vperm.xlu1 %116, %v11_v4   ;;  %28 = vperm.xlu0 %115, %v9_v5  }
   0xc   :  { %48 = vperm.xlu2 %117, %v13_v6  }
  0x12   :  { %58 = vperm.xlu1 %116, %v15_v7   ;;  %53 = vperm.xlu0 %115, %v14_v8  }
  0x5e   :  { %v44_v13 = vpop.permute.xlu2 %43 }
  0x5f   :  { %v65_v14 = vsub.f32 %v44_v13, %v19_v12 }
  0x61   :  { %v73_v15 = vmul.f32 %v65_v14, %v65_v14 }
  0x63   :  { %v81_v16 = vmul.f32 -48.02, %v73_v15 }
  0x65   :  { %v93_v17 = vmul.f32 1.442695, %v81_v16 }
  0x66   :  { %v49_v18 = vpop.permute.xlu2 %48 }
  0x67   :  { %118 = vpow2.f32 %v93_v17  ;;  %v66_v19 = vsub.f32 %v49_v18, %v19_v12 }
  0x69   :  { %v74_v20 = vmul.f32 %v66_v19, %v66_v19 }
  0x6b   :  { %v82_v21 = vmul.f32 -48.02, %v74_v20 }
  0x6d   :  { %v119_v22 = vpop.eup %118  ;;  %v95_v23 = vmul.f32 1.442695, %v82_v21 }
  0x6e   :  { %106 = vst.msk [vmem:[%s202_s1 + $0x20] sm:$0xff] %vm101_vm0, %v119_v22 }
  0x6f   :  { %120 = vpow2.f32 %v95_v23 }
  0x74   :  { %v34_v24 = vpop.permute.xlu1 %33  ;;  %v24_v25 = vpop.permute.xlu0 %23 }
  0x75   :  { %v121_v26 = vpop.eup %120  ;;  %v63_v27 = vsub.f32 %v34_v24, %v19_v12  ;;  %v61_v28 = vsub.f32 %v24_v25, %v19_v12 }
  0x76   :  { %107 = vst.msk [vmem:[%s202_s1 + $0x28] sm:$0xff] %vm101_vm0, %v121_v26 }
  0x77   :  { %v71_v29 = vmul.f32 %v63_v27, %v63_v27  ;;  %v69_v30 = vmul.f32 %v61_v28, %v61_v28 }
  0x79   :  { %v79_v31 = vmul.f32 -48.02, %v71_v29  ;;  %v77_v32 = vmul.f32 -48.02, %v69_v30 }
  0x7b   :  { %v89_v33 = vmul.f32 1.442695, %v79_v31  ;;  %v85_v34 = vmul.f32 1.442695, %v77_v32 }
  0x7c   :  { %v39_v35 = vpop.permute.xlu1 %38  ;;  %v29_v36 = vpop.permute.xlu0 %28 }
  0x7d   :  { %122 = vpow2.f32 %v89_v33  ;;  %v64_v37 = vsub.f32 %v39_v35, %v19_v12  ;;  %v62_v38 = vsub.f32 %v29_v36, %v19_v12 }
  0x7e   :  { %124 = vpow2.f32 %v85_v34 }
  0x7f   :  { %v72_v39 = vmul.f32 %v64_v37, %v64_v37  ;;  %v70_v40 = vmul.f32 %v62_v38, %v62_v38 }
  0x81   :  { %v80_v41 = vmul.f32 -48.02, %v72_v39  ;;  %v78_v42 = vmul.f32 -48.02, %v70_v40 }
  0x83   :  { %v123_v43 = vpop.eup %122  ;;  %v91_v44 = vmul.f32 1.442695, %v80_v41  ;;  %v87_v45 = vmul.f32 1.442695, %v78_v42 }
  0x84   :  { %v125_v46 = vpop.eup %124  ;;  %104 = vst.msk [vmem:[%s202_s1 + $0x10] sm:$0xff] %vm101_vm0, %v123_v43  ;;  %v59_v47 = vpop.permute.xlu1 %58 }
  0x85   :  { %v54_v48 = vpop.permute.xlu0 %53  ;;  %102 = vst.msk [vmem:[%s202_s1] sm:$0xff] %vm101_vm0, %v125_v46  ;;  %126 = vpow2.f32 %v91_v44  ;;  %v68_v49 = vsub.f32 %v59_v47, %v19_v12 }
  0x86   :  { %v67_v50 = vsub.f32 %v54_v48, %v19_v12  ;;  %128 = vpow2.f32 %v87_v45 }
  0x87   :  { %v76_v51 = vmul.f32 %v68_v49, %v68_v49 }
  0x88   :  { %v75_v52 = vmul.f32 %v67_v50, %v67_v50 }
  0x89   :  { %v84_v53 = vmul.f32 -48.02, %v76_v51 }
  0x8a   :  { %v83_v54 = vmul.f32 -48.02, %v75_v52 }
  0x8b   :  { %v127_v55 = vpop.eup %126  ;;  %v99_v56 = vmul.f32 1.442695, %v84_v53 }
  0x8c   :  { %v97_v57 = vmul.f32 1.442695, %v83_v54  ;;  %v129_v58 = vpop.eup %128  ;;  %105 = vst.msk [vmem:[%s202_s1 + $0x18] sm:$0xff] %vm101_vm0, %v127_v55 }
  0x8d   :  { %103 = vst.msk [vmem:[%s202_s1 + $0x8] sm:$0xff] %vm101_vm0, %v129_v58  ;;  %130 = vpow2.f32 %v99_v56 }
  0x8e   :  { %132 = vpow2.f32 %v97_v57 }
  0x93   :  { %v131_v59 = vpop.eup %130 }
  0x94   :  { %v133_v60 = vpop.eup %132  ;;  %109 = vst.msk [vmem:[%s202_s1 + $0x38] sm:$0xff] %vm101_vm0, %v131_v59 }
  0x95   :  { %108 = vst.msk [vmem:[%s202_s1 + $0x30] sm:$0xff] %vm101_vm0, %v133_v60 }

</bundles_post_ra>
